<compile_context>
chip_gen: v7x
topology: tpu7x:2x2x1
jax: 0.10.0
libtpu: 0.0.40
codegen_flags: <defaults>
</compile_context>

<pallas_src>
from typing import NamedTuple

import jax
import jax.numpy as jnp
from jax.experimental import pallas as pl
from jax.experimental.pallas import tpu as pltpu


def _round_up(x, m):
    return pl.cdiv(x, m) * m


def _pick_tile(dim, unit, t_max):
    """Largest multiple of `unit` that divides `dim` (a unit multiple) and is <= t_max."""
    t = max(unit, (min(t_max, dim) // unit) * unit)
    while dim % t:
        t -= unit
    return t


# ---------------------------------------------------------------------------
# Kernel
# ---------------------------------------------------------------------------

def _fc_kernel(x_ref, w_ref, b_ref, o_ref, acc_ref):
    # Grid = (M tiles, N tiles, K tiles); K innermost reduction.
    #   x_ref  : (tm, tk)  input tile
    #   w_ref  : (tk, tn)  pre-transposed weight tile ((in_ch, out_ch) layout)
    #   b_ref  : (1,  tn)  bias slice
    #   o_ref  : (tm, tn)  output tile
    #   acc_ref: (tm, tn)  f32 accumulator, resident across the K axis
    k = pl.program_id(2)

    @pl.when(k == 0)
    def _():
        # Fold the bias into the accumulator init (no epilogue VPU add).
        acc_ref[...] = jnp.broadcast_to(
            b_ref[...].astype(jnp.float32), acc_ref.shape)

    acc_ref[...] += jnp.dot(x_ref[...], w_ref[...],
                            preferred_element_type=jnp.float32)

    @pl.when(k == pl.num_programs(2) - 1)
    def _():
        o_ref[...] = acc_ref[...].astype(o_ref.dtype)


# ---------------------------------------------------------------------------
# One-time parameter layout (do NOT redo this per call)
# ---------------------------------------------------------------------------

class FCParams(NamedTuple):
    w_t: jax.Array    # (K_pad, N_pad) = padded weight.T, contraction-ready
    bias: jax.Array   # (1, N_pad)
    out_ch: int
    in_ch: int


def prepare_fc_params(weight, bias, *, compute_dtype=None):
    """Pad K/N to 128-multiples and pre-transpose the weight to (in_ch, out_ch).

    weight : (out_ch, in_ch)  (PyTorch nn.Linear convention)
    bias   : (out_ch,)
    compute_dtype: optional (e.g. jnp.bfloat16) — opt-in MXU-native compute.
    """
    out_ch, in_ch = weight.shape
    k_pad = _round_up(in_ch, 128)
    n_pad = _round_up(out_ch, 128)

    w_t = weight.T                       # (in_ch, out_ch)
    if compute_dtype is not None:
        w_t = w_t.astype(compute_dtype)
    if (k_pad, n_pad) != (in_ch, out_ch):
        w_t = jnp.pad(w_t, ((0, k_pad - in_ch), (0, n_pad - out_ch)))

    b2d = bias.reshape(1, out_ch)
    if n_pad != out_ch:
        b2d = jnp.pad(b2d, ((0, 0), (0, n_pad - out_ch)))

    return FCParams(w_t, b2d, out_ch, in_ch)


# ---------------------------------------------------------------------------
# Forward
# ---------------------------------------------------------------------------

def fc_forward(x, params, *, tm=512, tn=512, tk=1024):
    """Linear layer: x @ weight.T + bias, using pre-laid-out `params`."""
    w_t, b2d, out_ch, in_ch = params
    assert x.shape[-1] == in_ch, (x.shape, in_ch)
    lead_shape = x.shape[:-1]
    out_dtype = x.dtype

    x2d = x.reshape(-1, in_ch)
    # Explicit compute dtype: activations follow the (possibly bf16) weight.
    if x2d.dtype != w_t.dtype:
        x2d = x2d.astype(w_t.dtype)
    M = x2d.shape[0]
    k_pad, n_pad = w_t.shape
    itemsize = jnp.dtype(x2d.dtype).itemsize

    # Tile sizes that divide the (already padded) K / N extents.
    tk = _pick_tile(k_pad, 128, tk)
    tn = _pick_tile(n_pad, 128, tn)

    # M: pad only to the sublane multiple when it fits in one tile (the common
    # small-M weight-streaming regime); otherwise pad to a tile multiple.
    sub = max(8, 32 // itemsize)
    m_sub = _round_up(M, sub)
    if m_sub <= tm:
        tm = m_sub
        m_pad = m_sub
    else:
        tm = _round_up(min(tm, m_sub), sub)
        m_pad = _round_up(M, tm)

    # Guarantee >= 2 parallel output tiles so both v7x TensorCores get work
    # (near-free on single-TC chips: small-M means x re-reads are tiny).
    if m_pad == tm and n_pad == tn and n_pad >= 256:
        tn = _pick_tile(n_pad, 128, max(128, tn // 2))

    pad_m = m_pad - M
    pad_k = k_pad - in_ch
    if pad_m or pad_k:
        x2d = jnp.pad(x2d, ((0, pad_m), (0, pad_k)))

    grid = (m_pad // tm, n_pad // tn, k_pad // tk)

    # Deeper weight pipelining for the pure weight-streaming case.
    w_bufs = 3 if (m_pad == tm and grid[1] * grid[2] >= 3) else 2

    # VMEM budget: working set * headroom, clamped to the chip's capacity
    # (generation-aware: ~64 MiB/TC on v7x, 128 MiB on v5e/v6e).
    out_itemsize = jnp.dtype(out_dtype).itemsize
    working = (2 * tm * tk * itemsize           # x double buffer
               + 3 * tk * tn * itemsize         # weight buffers (<= 3)
               + 2 * tm * tn * out_itemsize     # output double buffer
               + tm * tn * 4                    # f32 accumulator
               + 2 * tn * 4)                    # bias
    try:
        vmem_cap = int(pltpu.get_tpu_info().vmem_capacity_bytes)
    except Exception:
        vmem_cap = 64 << 20
    vmem_limit = min(max(int(working * 1.5), 32 << 20), (vmem_cap * 3) // 4)
    vmem_limit = min(max(vmem_limit, int(working * 1.25)), vmem_cap)

    # Advisory cost estimate (unpadded dims to avoid over-reporting).
    cost = pl.CostEstimate(
        flops=2 * M * in_ch * out_ch,
        transcendentals=0,
        bytes_accessed=int(M * in_ch * itemsize
                           + w_t.size * itemsize
                           + b2d.size * jnp.dtype(b2d.dtype).itemsize
                           + M * out_ch * out_itemsize),
    )

    def run(weight_buffers):
        w_index_map = lambda i, j, k: (k, j)
        if weight_buffers > 2 and hasattr(pl, "Buffered"):
            try:
                w_spec = pl.BlockSpec((tk, tn), w_index_map,
                                      pipeline_mode=pl.Buffered(weight_buffers))
            except TypeError:
                w_spec = pl.BlockSpec((tk, tn), w_index_map)
        else:
            w_spec = pl.BlockSpec((tk, tn), w_index_map)

        return pl.pallas_call(
            _fc_kernel,
            out_shape=jax.ShapeDtypeStruct((m_pad, n_pad), out_dtype),
            grid_spec=pltpu.PrefetchScalarGridSpec(
                num_scalar_prefetch=0,
                grid=grid,
                in_specs=[
                    pl.BlockSpec((tm, tk), lambda i, j, k: (i, k)),   # x tile
                    w_spec,                                           # W^T tile
                    pl.BlockSpec((1, tn), lambda i, j, k: (0, j)),    # bias
                ],
                out_specs=pl.BlockSpec((tm, tn), lambda i, j, k: (i, j)),
                scratch_shapes=[pltpu.VMEM((tm, tn), jnp.float32)],
            ),
            compiler_params=pltpu.CompilerParams(
                dimension_semantics=("parallel", "parallel", "arbitrary"),
                vmem_limit_bytes=int(vmem_limit),
            ),
            cost_estimate=cost,
        )(x2d, w_t, b2d)

    try:
        out = run(w_bufs)
    except Exception:
        if w_bufs > 2:
            out = run(2)   # safe fallback to default double-buffering
        else:
            raise

    out = out[:M, :out_ch]
    return out.reshape(*lead_shape, out_ch)


# ---------------------------------------------------------------------------
# Module-style wrapper (mirrors the PyTorch FC module)
# ---------------------------------------------------------------------------

class FC:
    """Pallas/JAX equivalent of the PyTorch `FC` module (one nn.Linear)."""

    def __init__(self, in_ch, out_ch, *, key=None, dtype=jnp.float32,
                 compute_dtype=None):
        if key is None:
            key = jax.random.PRNGKey(0)
        kw, kb = jax.random.split(key)
        bound = 1.0 / (in_ch ** 0.5)   # nn.Linear default U(-1/sqrt(in), 1/sqrt(in))
        self.weight = jax.random.uniform(kw, (out_ch, in_ch), dtype, -bound, bound)
        self.bias = jax.random.uniform(kb, (out_ch,), dtype, -bound, bound)
        # One-time layout (pad + transpose): no per-call weight copies.
        self.params = prepare_fc_params(self.weight, self.bias,
                                        compute_dtype=compute_dtype)

    def __call__(self, x, **tile_kwargs):
        return fc_forward(x, self.params, **tile_kwargs)


if __name__ == "__main__":
    key = jax.random.PRNGKey(0)
    k_x, k_x3, k_xl, k_p1, k_p2 = jax.random.split(key, 5)

    # --- Small layer (batch=16, in_ch=32, out_ch=64), f32. ---
    in_ch, out_ch = 32, 64
    fc = FC(in_ch, out_ch, key=k_p1)

    x = jax.random.normal(k_x, (16, in_ch), jnp.float32)
    y = fc(x)
    jax.block_until_ready(y)
    y_ref = x @ fc.weight.T + fc.bias
    assert y.shape == (16, out_ch)
    assert jnp.allclose(y, y_ref, atol=1e-5, rtol=1e-5)

    # --- Arbitrary leading dims (flattened/unflattened in wrapper). ---
    x3 = jax.random.normal(k_x3, (2, 8, in_ch), jnp.float32)
    y3 = fc(x3)
    jax.block_until_ready(y3)
    y3_ref = x3 @ fc.weight.T + fc.bias
    assert y3.shape == (2, 8, out_ch)
    assert jnp.allclose(y3, y3_ref, atol=1e-5, rtol=1e-5)

    # --- Multi-tile grid (several K and N steps) exercising the accumulator
    #     init/finalize, the bias fold and the deep-buffered weight path. ---
    in2, out2 = 256, 384
    fc2 = FC(in2, out2, key=k_p2)
    xl = jax.random.normal(k_xl, (64, in2), jnp.float32)
    yl = fc2(xl, tm=64, tn=128, tk=128)
    jax.block_until_ready(yl)
    yl_ref = xl @ fc2.weight.T + fc2.bias
    assert yl.shape == (64, out2)
    assert jnp.allclose(yl, yl_ref, atol=2e-3, rtol=2e-3)

    # --- Opt-in bf16 compute path (f32 accumulation), looser tolerance. ---
    fc2_bf16 = FC(in2, out2, key=k_p2, compute_dtype=jnp.bfloat16)
    yb = fc2_bf16(xl)
    jax.block_until_ready(yb)
    assert yb.dtype == xl.dtype
    assert jnp.allclose(yb, yl_ref, atol=5e-2, rtol=5e-2)

    print("KERNEL_OK")
</pallas_src>

<mosaic_0001>
module attributes {stable_mosaic.version = 11 : i64} {
  func.func @_fc_kernel(%arg0: i32, %arg1: i32, %arg2: i32, %arg3: memref<16x128xf32, #tpu.memory_space<vmem>>, %arg4: memref<128x128xf32, #tpu.memory_space<vmem>>, %arg5: memref<1x128xf32, #tpu.memory_space<vmem>>, %arg6: memref<16x128xf32, #tpu.memory_space<vmem>>, %arg7: memref<16x128xf32, #tpu.memory_space<vmem>>) attributes {dimension_semantics = [#tpu.dimension_semantics<parallel>, #tpu.dimension_semantics<parallel>, #tpu.dimension_semantics<arbitrary>], iteration_bounds = array<i64: 1, 1, 1>, scalar_prefetch = 0 : i64, scratch_operands = 1 : i64, tpu.core_type = #tpu.core_type<tc>, window_params = [{transform_indices = @transform_0, window_bounds = array<i64: 16, 128>}, {transform_indices = @transform_1, window_bounds = array<i64: 128, 128>}, {transform_indices = @transform_2, window_bounds = array<i64: 1, 128>}, {transform_indices = @transform_3, window_bounds = array<i64: 16, 128>}]} {
    %c0_i32 = arith.constant 0 : i32
    %0 = arith.cmpi eq, %arg2, %c0_i32 : i32
    %1 = arith.extui %0 : i1 to i32
    %c0_i32_0 = arith.constant 0 : i32
    %2 = arith.cmpi ne, %1, %c0_i32_0 : i32
    scf.if %2 {
      %c0_10 = arith.constant 0 : index
      %c0_11 = arith.constant 0 : index
      %12 = vector.load %arg5[%c0_10, %c0_11] : memref<1x128xf32, #tpu.memory_space<vmem>>, vector<1x128xf32>
      %13 = vector.shape_cast %12 : vector<1x128xf32> to vector<1x128xf32>
      %14 = vector.broadcast %13 : vector<1x128xf32> to vector<16x128xf32>
      %c0_12 = arith.constant 0 : index
      %c0_13 = arith.constant 0 : index
      %15 = vector.load %arg7[%c0_12, %c0_13] : memref<16x128xf32, #tpu.memory_space<vmem>>, vector<16x128xf32>
      tpu.vector_store %arg7[%c0_12, %c0_13], %14 {strides = array<i32>} : memref<16x128xf32, #tpu.memory_space<vmem>>, vector<16x128xf32>,
    } else {
    }
    %c0 = arith.constant 0 : index
    %c0_1 = arith.constant 0 : index
    %3 = vector.load %arg7[%c0, %c0_1] : memref<16x128xf32, #tpu.memory_space<vmem>>, vector<16x128xf32>
    %c0_2 = arith.constant 0 : index
    %c0_3 = arith.constant 0 : index
    %4 = vector.load %arg3[%c0_2, %c0_3] : memref<16x128xf32, #tpu.memory_space<vmem>>, vector<16x128xf32>
    %c0_4 = arith.constant 0 : index
    %c0_5 = arith.constant 0 : index
    %5 = vector.load %arg4[%c0_4, %c0_5] : memref<128x128xf32, #tpu.memory_space<vmem>>, vector<128x128xf32>
    %cst = arith.constant dense<0.000000e+00> : vector<16x128xf32>
    %6 = tpu.matmul %4, %5, %cst {dimension_numbers = #tpu.dot_dimension_numbers<[1], [0], [0], [1], [0, 0, 1, 1], [], []>} : vector<16x128xf32>, vector<128x128xf32>, vector<16x128xf32> -> vector<16x128xf32>
    %7 = arith.addf %3, %6 : vector<16x128xf32>
    %c0_6 = arith.constant 0 : index
    %c0_7 = arith.constant 0 : index
    %8 = vector.load %arg7[%c0_6, %c0_7] : memref<16x128xf32, #tpu.memory_space<vmem>>, vector<16x128xf32>
    tpu.vector_store %arg7[%c0_6, %c0_7], %7 {strides = array<i32>} : memref<16x128xf32, #tpu.memory_space<vmem>>, vector<16x128xf32>,
    %c0_i32_8 = arith.constant 0 : i32
    %9 = arith.cmpi eq, %arg2, %c0_i32_8 : i32
    %10 = arith.extui %9 : i1 to i32
    %c0_i32_9 = arith.constant 0 : i32
    %11 = arith.cmpi ne, %10, %c0_i32_9 : i32
    scf.if %11 {
      %c0_10 = arith.constant 0 : index
      %c0_11 = arith.constant 0 : index
      %12 = vector.load %arg7[%c0_10, %c0_11] : memref<16x128xf32, #tpu.memory_space<vmem>>, vector<16x128xf32>
      %c0_12 = arith.constant 0 : index
      %c0_13 = arith.constant 0 : index
      %13 = vector.load %arg6[%c0_12, %c0_13] : memref<16x128xf32, #tpu.memory_space<vmem>>, vector<16x128xf32>
      tpu.vector_store %arg6[%c0_12, %c0_13], %12 {strides = array<i32>} : memref<16x128xf32, #tpu.memory_space<vmem>>, vector<16x128xf32>,
    } else {
    }
    return
  }
  func.func @transform_0(%arg0: i32, %arg1: i32, %arg2: i32) -> (i32, i32) {
    %c0_i32 = arith.constant 0 : i32
    return %arg0, %arg2 : i32, i32
  }
  func.func @transform_1(%arg0: i32, %arg1: i32, %arg2: i32) -> (i32, i32) {
    %c0_i32 = arith.constant 0 : i32
    return %arg2, %arg1 : i32, i32
  }
  func.func @transform_2(%arg0: i32, %arg1: i32, %arg2: i32) -> (i32, i32) {
    %c0_i32 = arith.constant 0 : i32
    %c0_i32_0 = arith.constant 0 : i32
    return %c0_i32, %arg1 : i32, i32
  }
  func.func @transform_3(%arg0: i32, %arg1: i32, %arg2: i32) -> (i32, i32) {
    %c0_i32 = arith.constant 0 : i32
    return %arg0, %arg1 : i32, i32
  }
}

</mosaic_0001>

<bundles_post_ra>
// kernel: tpu_custom_call.1
= control target key start
LH: loop header
LB: loop body
LE: loop exit
PB: predicated region body
PF: predicated region fallthrough
CT: control target
= control target key end

     0   :  { %8 = vsyncpa [#allocation4], 0  ;;  %s416_s0 = inlined_call_operand.hbm [shape: f32[16,128], index: 0, kind: input, shape index: {}]   ;;  %s417_s1 = inlined_call_operand.hbm [shape: f32[128,128], index: 1, kind: input, shape index: {}]   ;;  %s418_s2 = inlined_call_operand.vmem [shape: f32[1,128], index: 2, kind: input, shape index: {}]   ;;  %s419_s3 = inlined_call_operand.hbm [shape: f32[16,128], index: 3, kind: output, shape index: {}]  }
   0x1   :  { %9 = vsyncpa [#allocation7], 0 }
   0x2   :  { %10 = vsyncpa [#allocation5], 0  ;;  %s343_s12 = smov [#allocation3]   ;;  %s271_s16 = scalar_lea.hbm %s416_s0, 256 }
   0x3   :  { %s16_s13 = sshll.u32 %s343_s12, 4  ;;  %p272_p0 = scmp.ne.s32.totalorder %s416_s0, %s271_s16  ;;  %s17_s13 = int_to_ptr.vmem [resolvable:$true] %s16_s13 }
   0x4   :  { %p275_p1 = scmp.lt.u32.totalorder %s271_s16, %s416_s0 }
   0x6   :  { %p277_p2 = pnand %p275_p1, %p272_p0 }
   0x8   :  { %280 = shalt.err (!%p277_p2)
}
   0x9   :  { %s281_s21 = scalar_lea.vmem %s17_s13, 256  ;;  %p286_p4 = scmp.lt.s32.totalorder %s17_s13, %s17_s13 }
   0xa   :  { %p282_p3 = scmp.ne.s32.totalorder %s17_s13, %s281_s21  ;;  %p287_p5 = scmp.lt.s32.totalorder %s281_s21, %s281_s21 }
   0xc   :  { %p288_p6 = por %p287_p5, %p286_p4 }
   0xe   :  { %p289_p7 = pnand %p288_p6, %p282_p3 }
  0x10   :  { %292 = shalt.err (!%p289_p7)
}
  0x11   :  { %s344_s22 = smov 128   ;;  %s345_s23 = smov 8  }
  0x12   :  { %22 = dma.hbm_to_vmem [thread:$0]  %s416_s0, 256, %s17_s13, [#allocation4], %s344_s22, %s344_s22, %s345_s23  }
  0x13   :  { %s346_s26 = smov [#allocation6]   ;;  %s293_s30 = scalar_lea.hbm %s417_s1, 2048 }
  0x14   :  { %s28_s27 = sshll.u32 %s346_s26, 4  ;;  %p294_p8 = scmp.ne.s32.totalorder %s417_s1, %s293_s30  ;;  %s29_s27 = int_to_ptr.vmem [resolvable:$true] %s28_s27 }
  0x15   :  { %p297_p9 = scmp.lt.u32.totalorder %s293_s30, %s417_s1 }
  0x17   :  { %p299_p10 = pnand %p297_p9, %p294_p8 }
  0x19   :  { %302 = shalt.err (!%p299_p10)
}
  0x1a   :  { %s303_s8 = scalar_lea.vmem %s29_s27, 2048  ;;  %p308_p12 = scmp.lt.s32.totalorder %s29_s27, %s29_s27 }
  0x1b   :  { %p304_p11 = scmp.ne.s32.totalorder %s29_s27, %s303_s8  ;;  %p309_p13 = scmp.lt.s32.totalorder %s303_s8, %s303_s8 }
  0x1d   :  { %p310_p0 = por %p309_p13, %p308_p12 }
  0x1f   :  { %p311_p1 = pnand %p310_p0, %p304_p11 }
  0x21   :  { %314 = shalt.err (!%p311_p1)
}
  0x22   :  { %34 = dma.hbm_to_vmem [thread:$0]  %s417_s1, 2048, %s29_s27, [#allocation7], %s344_s22, %s344_s22, %s345_s23  }
  0x23   :  { %337 = dma.done.wait [#allocation4], 256  }
  0x24   :  { %338 = vsyncadd [#allocation4], 4294967040 }
  0x25   :  { %339 = dma.done.wait [#allocation7], 2048  }
  0x26   :  { %340 = vsyncadd [#allocation7], 4294965248  ;;  %v60_v0 = vld [vmem:[#allocation6] sm:$0xff]  ;;  %v61_v1 = vld [vmem:[#allocation6 + $0x8] sm:$0xff]  ;;  %s347_s11 = smov [#allocation8]  }
  0x27   :  { %v62_v2 = vld [vmem:[#allocation6 + $0x10] sm:$0xff]  ;;  %v234_v3 = vpack.c.bf16 %v61_v1, %v60_v0  ;;  %v63_v4 = vld [vmem:[#allocation6 + $0x18] sm:$0xff]  ;;  %v64_v6 = vld [vmem:[#allocation6 + $0x20] sm:$0xff]  ;;  %s167_s12 = sshll.u32 %s347_s11, 4  ;;  %s168_s12 = int_to_ptr.vmem [resolvable:$true] %s167_s12 }
  0x28   :  { %v238_v5 = vpack.c.bf16 %v63_v4, %v62_v2  ;;  %v65_v7 = vld [vmem:[#allocation6 + $0x28] sm:$0xff]  ;;  %v58_v9 = vld [vmem:[#allocation3] sm:$0xff]  ;;  %v67_v11 = vld [vmem:[#allocation6 + $0x38] sm:$0xff]  ;;  %s315_s13 = scalar_lea.vmem %s168_s12, 256  ;;  %p320_p3 = scmp.lt.s32.totalorder %s168_s12, %s168_s12 }
  0x29   :  { %235 = vmatprep.subr.bf16.mxu0 %v234_v3  ;;  %v242_v8 = vpack.c.bf16 %v65_v7, %v64_v6  ;;  %v66_v10 = vld [vmem:[#allocation6 + $0x30] sm:$0xff]  ;;  %231 = vmatprep.mubr.f32.mxu0 %v58_v9  ;;  %v68_v13 = vld [vmem:[#allocation6 + $0x40] sm:$0xff]  ;;  %v69_v14 = vld [vmem:[#allocation6 + $0x48] sm:$0xff]  ;;  %p316_p2 = scmp.ne.s32.totalorder %s168_s12, %s315_s13  ;;  %p321_p4 = scmp.lt.s32.totalorder %s315_s13, %s315_s13 }
  0x2a   :  { %237 = vmatpush3.bf16.msra.mxu0 %v234_v3  ;;  %v246_v12 = vpack.c.bf16 %v67_v11, %v66_v10  ;;  %v250_v15 = vpack.c.bf16 %v69_v14, %v68_v13  ;;  %v70_v16 = vld [vmem:[#allocation6 + $0x50] sm:$0xff]  ;;  %v71_v17 = vld [vmem:[#allocation6 + $0x58] sm:$0xff]  ;;  %v72_v19 = vld [vmem:[#allocation6 + $0x60] sm:$0xff] }
  0x2b   :  { %239 = vmatprep.subr.bf16.mxu0 %v238_v5  ;;  %v254_v18 = vpack.c.bf16 %v71_v17, %v70_v16  ;;  %v73_v20 = vld [vmem:[#allocation6 + $0x68] sm:$0xff]  ;;  %v74_v22 = vld [vmem:[#allocation6 + $0x70] sm:$0xff]  ;;  %v75_v23 = vld [vmem:[#allocation6 + $0x78] sm:$0xff]  ;;  %p322_p5 = por %p321_p4, %p320_p3 }
  0x2c   :  { %v258_v21 = vpack.c.bf16 %v73_v20, %v72_v19  ;;  %v262_v24 = vpack.c.bf16 %v75_v23, %v74_v22  ;;  %v59_v25 = vld [vmem:[#allocation3 + $0x8] sm:$0xff]  ;;  %v180_v26 = vld [vmem:[%s418_s2] ss:$0 sm:$0xff] }
  0x2d   :  { %p323_p6 = pnand %p322_p5, %p316_p2 }
  0x2e   :  { %241 = vmatpush3.bf16.msra.mxu0 %v238_v5 }
  0x2f   :  { %243 = vmatprep.subr.bf16.mxu0 %v242_v8 }
  0x32   :  { %245 = vmatpush3.bf16.msra.mxu0 %v242_v8 }
  0x33   :  { %247 = vmatprep.subr.bf16.mxu0 %v246_v12 }
  0x36   :  { %249 = vmatpush3.bf16.msra.mxu0 %v246_v12 }
  0x37   :  { %251 = vmatprep.subr.bf16.mxu0 %v250_v15 }
  0x3a   :  { %253 = vmatpush3.bf16.msra.mxu0 %v250_v15 }
  0x3b   :  { %255 = vmatprep.subr.bf16.mxu0 %v254_v18 }
  0x3e   :  { %257 = vmatpush3.bf16.msra.mxu0 %v254_v18 }
  0x3f   :  { %259 = vmatprep.subr.bf16.mxu0 %v258_v21 }
  0x42   :  { %261 = vmatpush3.bf16.msra.mxu0 %v258_v21 }
  0x43   :  { %263 = vmatprep.subr.bf16.mxu0 %v262_v24 }
  0x46   :  { %265 = vmatpush3.bf16.msra.mxu0 %v262_v24 }
  0x49   :  { %232 = vmatmul.mubr.f32.vlgmr.msra.gmra.mrb[0].mxu0 %v59_v25 }
 0x11c   :  { %v233_v27 = vpop.f32.mrb[0].mxu0 }
 0x11d   :  { %v152_v28 = vadd.f32 %v233_v27, %v180_v26  ;;  %v142_v29 = vpop.f32.mrb[1].mxu0 }
 0x11e   :  { %v151_v30 = vadd.f32 %v180_v26, %v142_v29 }
 0x11f   :  { %161 = vst [vmem:[#allocation8 + $0x8] sm:$0xff] %v152_v28 }
 0x120   :  { %160 = vst [vmem:[#allocation8] sm:$0xff] %v151_v30 }
 0x121   :  { %326 = shalt.err (!%p323_p6)
}
 0x122   :  { %s327_s2 = scalar_lea.hbm %s419_s3, 256 }
 0x123   :  { %p328_p7 = scmp.ne.s32.totalorder %s419_s3, %s327_s2  ;;  %p331_p8 = scmp.lt.u32.totalorder %s327_s2, %s419_s3 }
 0x125   :  { %p333_p9 = pnand %p331_p8, %p328_p7 }
 0x127   :  { %336 = shalt.err (!%p333_p9)
}
 0x128   :  { %173 = dma.vmem_to_hbm [thread:$0]  %s168_s12, 256, %s419_s3, [#allocation5], %s344_s22, %s344_s22, %s345_s23  }
 0x129   :  { %341 = dma.done.wait [#allocation5], 256  }
 0x12a   :  { %342 = vsyncadd [#allocation5], 4294967040 }
 0x12b   :  { %177 = vsyncpa [#allocation4], 1 }
 0x12c   :  { %178 = vsyncpa [#allocation7], 1 }
 0x12d   :  { %179 = vsyncpa [#allocation5], 1 }

</bundles_post_ra>
